<compile_context>
chip_gen: v7x
topology: tpu7x:2x2x1
jax: 0.10.0
libtpu: 0.0.40
codegen_flags: <defaults>
</compile_context>

<pallas_src>
import jax
import jax.numpy as jnp
from jax.experimental import pallas as pl
from jax.experimental.pallas import tpu as pltpu

_LANE = 128


def _sublane_multiple(dtype) -> int:
    # f32 -> 8, bf16/f16 -> 16, int8/bool/fp8 -> 32
    return max(8, 32 // jnp.dtype(dtype).itemsize)


def _default_num_cores() -> int:
    # v7x has 2 TensorCores per chip; on 1-TC chips (v5e/v6e) a 2-way split is
    # just a serial loop that re-processes one fully-masked duplicate tile.
    try:
        kind = jax.devices()[0].device_kind.lower()
        if "v7" in kind:
            return 2
    except Exception:
        pass
    return 1


def _vmem_budgets():
    """Returns (double-buffered input budget, explicit vmem limit) in bytes."""
    cap = 128 * 1024 * 1024
    try:
        cap = pltpu.get_tpu_info().vmem_capacity_bytes
    except Exception:
        pass
    if cap <= 64 * 1024 * 1024:
        # v7x: 64 MiB physical per TensorCore -> leave headroom for outputs
        # and Mosaic internal scratch.
        return 20 * 1024 * 1024, 28 * 1024 * 1024
    # v5e / v6e: 128 MiB physical; raise well past the 16/32 MiB scoped default.
    return 32 * 1024 * 1024, 40 * 1024 * 1024


# ---------------------------------------------------------------------------
# Kernels
# ---------------------------------------------------------------------------
def _make_kernel_aligned(threshold, rows, tile_rows, tiles_per_core):
    """Blocks are (B, tile_rows, 128); lane-partial accumulators (B, 128)."""

    def kernel(x_ref, t_ref, inter_ref, denom_ref):
        c = pl.program_id(0)
        k = pl.program_id(1)

        @pl.when(k == 0)
        def _init():
            inter_ref[...] = jnp.zeros_like(inter_ref)
            denom_ref[...] = jnp.zeros_like(denom_ref)

        x = x_ref[...]                           # native dtype
        t = t_ref[...].astype(jnp.float32)
        pred = x > threshold                     # binarize predictions

        # Rows of this tile that hold real data (<=0 for clamped duplicates).
        valid_rows = rows - (c * tiles_per_core + k) * tile_rows

        def accumulate(predf, tt):
            # Sum only over the row (sublane) axis -> cheap VPU adds; the
            # final 128-lane fold happens once in the wrapper.
            inter_ref[0, :, :] += jnp.sum(predf * tt, axis=1)
            denom_ref[0, :, :] += jnp.sum(predf + tt, axis=1)

        @pl.when(valid_rows >= tile_rows)
        def _fast():                             # interior tile: no masking
            accumulate(pred.astype(jnp.float32), t)

        @pl.when(valid_rows < tile_rows)
        def _masked():                           # tail / duplicate tile
            row_ids = jax.lax.broadcasted_iota(jnp.int32, pred.shape, 1)
            valid = row_ids < valid_rows
            predf = jnp.logical_and(pred, valid).astype(jnp.float32)
            tt = jnp.where(valid, t, 0.0)        # garbage tail may be NaN
            accumulate(predf, tt)

    return kernel


def _make_kernel_ragged(threshold, n, tile_cols, tiles_per_core):
    """Blocks are (B, tile_cols) over the raw [B, N] view (N % 128 != 0)."""

    def kernel(x_ref, t_ref, inter_ref, denom_ref):
        c = pl.program_id(0)
        k = pl.program_id(1)

        @pl.when(k == 0)
        def _init():
            inter_ref[...] = jnp.zeros_like(inter_ref)
            denom_ref[...] = jnp.zeros_like(denom_ref)

        x = x_ref[...]                           # (B, tile_cols) native dtype
        t = t_ref[...].astype(jnp.float32)
        pred = x > threshold

        valid_cols = n - (c * tiles_per_core + k) * tile_cols

        def accumulate(predf, tt):
            inter_ref[0] += jnp.sum(predf * tt, axis=1, keepdims=True)
            denom_ref[0] += jnp.sum(predf + tt, axis=1, keepdims=True)

        @pl.when(valid_cols >= tile_cols)
        def _fast():
            accumulate(pred.astype(jnp.float32), t)

        @pl.when(valid_cols < tile_cols)
        def _masked():
            col_ids = jax.lax.broadcasted_iota(jnp.int32, pred.shape, 1)
            valid = col_ids < valid_cols
            predf = jnp.logical_and(pred, valid).astype(jnp.float32)
            tt = jnp.where(valid, t, 0.0)
            accumulate(predf, tt)

    return kernel


# ---------------------------------------------------------------------------
# pallas_call wrappers (per-sample partial sums)
# ---------------------------------------------------------------------------
def _partial_sums_aligned(x, t, threshold, num_cores, input_budget,
                          vmem_limit, max_tile_rows):
    b, n = x.shape
    rows = n // _LANE
    x3 = x.reshape(b, rows, _LANE)   # metadata-only: n is a multiple of 128
    t3 = t.reshape(b, rows, _LANE)

    sm = max(_sublane_multiple(x.dtype), _sublane_multiple(t.dtype))
    bytes_per_row = b * _LANE * (x.dtype.itemsize + t.dtype.itemsize)
    tile_rows = input_budget // (2 * bytes_per_row)
    if max_tile_rows is not None:
        tile_rows = min(tile_rows, max_tile_rows)
    if tile_rows >= rows:
        tile_rows = rows                          # single full-extent block
    else:
        tile_rows = max(sm, (tile_rows // sm) * sm)

    tiles_total = pl.cdiv(rows, tile_rows)
    tiles_per_core = pl.cdiv(tiles_total, num_cores)

    def in_map(c, k):
        # Clamp so over-provisioned cores never DMA out of bounds; their
        # duplicate block is fully masked out inside the kernel.
        blk = jnp.minimum(c * tiles_per_core + k, tiles_total - 1)
        return (0, blk, 0)

    kernel = _make_kernel_aligned(threshold, rows, tile_rows, tiles_per_core)

    return pl.pallas_call(
        kernel,
        out_shape=(
            jax.ShapeDtypeStruct((num_cores, b, _LANE), jnp.float32),
            jax.ShapeDtypeStruct((num_cores, b, _LANE), jnp.float32),
        ),
        grid_spec=pltpu.PrefetchScalarGridSpec(
            num_scalar_prefetch=0,
            grid=(num_cores, tiles_per_core),
            in_specs=[
                pl.BlockSpec((b, tile_rows, _LANE), in_map),
                pl.BlockSpec((b, tile_rows, _LANE), in_map),
            ],
            out_specs=[
                pl.BlockSpec((1, b, _LANE), lambda c, k: (c, 0, 0)),
                pl.BlockSpec((1, b, _LANE), lambda c, k: (c, 0, 0)),
            ],
        ),
        compiler_params=pltpu.CompilerParams(
            dimension_semantics=("parallel", "arbitrary"),
            vmem_limit_bytes=vmem_limit,
        ),
    )(x3, t3)


def _partial_sums_ragged(x, t, threshold, num_cores, input_budget,
                         vmem_limit, max_tile_cols):
    b, n = x.shape
    bytes_per_col = b * (x.dtype.itemsize + t.dtype.itemsize)
    tile_cols = input_budget // (2 * bytes_per_col)
    if max_tile_cols is not None:
        tile_cols = min(tile_cols, max_tile_cols)
    tile_cols = (tile_cols // _LANE) * _LANE
    if tile_cols >= n or tile_cols == 0:
        tile_cols = n                             # single full-extent block

    tiles_total = pl.cdiv(n, tile_cols)
    tiles_per_core = pl.cdiv(tiles_total, num_cores)

    def in_map(c, k):
        blk = jnp.minimum(c * tiles_per_core + k, tiles_total - 1)
        return (0, blk)

    kernel = _make_kernel_ragged(threshold, n, tile_cols, tiles_per_core)

    return pl.pallas_call(
        kernel,
        out_shape=(
            jax.ShapeDtypeStruct((num_cores, b, 1), jnp.float32),
            jax.ShapeDtypeStruct((num_cores, b, 1), jnp.float32),
        ),
        grid_spec=pltpu.PrefetchScalarGridSpec(
            num_scalar_prefetch=0,
            grid=(num_cores, tiles_per_core),
            in_specs=[
                pl.BlockSpec((b, tile_cols), in_map),
                pl.BlockSpec((b, tile_cols), in_map),
            ],
            out_specs=[
                pl.BlockSpec((1, b, 1), lambda c, k: (c, 0, 0)),
                pl.BlockSpec((1, b, 1), lambda c, k: (c, 0, 0)),
            ],
        ),
        compiler_params=pltpu.CompilerParams(
            dimension_semantics=("parallel", "arbitrary"),
            vmem_limit_bytes=vmem_limit,
        ),
    )(x, t)


# ---------------------------------------------------------------------------
# Public API
# ---------------------------------------------------------------------------
def dice_metric(inputs, targets, smooth=1e-06, threshold=0.5,
                num_cores=None, max_tile_rows=None, max_tile_cols=None):
    """Pallas implementation of Dice_Metric.forward.

    inputs/targets: [B, C, D, H, W] (or any [B, ...]); returns a scalar f32.
    Inputs are kept in their native dtype (the threshold compare happens in
    the kernel); no padded HBM copies are made.
    """
    smooth = float(smooth)
    threshold = float(threshold)

    b = inputs.shape[0]
    x = inputs.reshape(b, -1)
    t = targets.reshape(b, -1)
    n = x.shape[1]
    assert n < 2 ** 31, "per-sample element count must fit in int32"

    if num_cores is None:
        num_cores = _default_num_cores()
    input_budget, vmem_limit = _vmem_budgets()

    if n % _LANE == 0:
        inter_p, denom_p = _partial_sums_aligned(
            x, t, threshold, num_cores, input_budget, vmem_limit, max_tile_rows)
    else:
        inter_p, denom_p = _partial_sums_ragged(
            x, t, threshold, num_cores, input_budget, vmem_limit, max_tile_cols)

    # Final combine: a few hundred scalars — plain JAX.
    inter = jnp.sum(inter_p, axis=(0, 2))         # (B,)
    denom = jnp.sum(denom_p, axis=(0, 2))         # (B,)
    dice = (2.0 * inter + smooth) / (denom + smooth)
    return jnp.mean(dice)


def _reference_dice(inputs, targets, smooth=1e-06, threshold=0.5):
    b = inputs.shape[0]
    x = (inputs.reshape(b, -1) > threshold).astype(jnp.float32)
    t = targets.reshape(b, -1).astype(jnp.float32)
    inter = jnp.sum(x * t, axis=1)
    dice = (2.0 * inter + smooth) / (jnp.sum(x, axis=1) + jnp.sum(t, axis=1) + smooth)
    return jnp.mean(dice)


if __name__ == "__main__":
    key = jax.random.PRNGKey(0)
    k1, k2, k3, k4, k5, k6 = jax.random.split(key, 6)

    # [batch, C, D, H, W] — small 5D volume as the module's docstring implies.
    B, C, D, H, W = 2, 4, 4, 8, 8
    inputs = jax.random.uniform(k1, (B, C, D, H, W), dtype=jnp.float32)
    targets = (jax.random.uniform(k2, (B, C, D, H, W)) > 0.5).astype(jnp.float32)
    out = jax.block_until_ready(dice_metric(inputs, targets))
    ref = _reference_dice(inputs, targets)
    assert jnp.allclose(out, ref, atol=1e-5, rtol=1e-5), (out, ref)

    # Aligned N with a partial last row-tile + explicit 2-core split:
    # exercises the gated row mask and the clamped duplicate-tile path.
    shape2 = (2, 1, 17, 16, 8)          # N = 17*128 -> rows = 17
    inputs2 = jax.random.uniform(k3, shape2, dtype=jnp.float32)
    targets2 = (jax.random.uniform(k4, shape2) > 0.5).astype(jnp.float32)
    out2 = jax.block_until_ready(
        dice_metric(inputs2, targets2, num_cores=2, max_tile_rows=8))
    ref2 = _reference_dice(inputs2, targets2)
    assert jnp.allclose(out2, ref2, atol=1e-5, rtol=1e-5), (out2, ref2)

    # Ragged N (not a multiple of 128): no wrapper pad, 2-D path with a
    # masked final column tile.
    shape3 = (2, 3, 5, 7, 11)           # N = 1155
    inputs3 = jax.random.uniform(k5, shape3, dtype=jnp.float32)
    targets3 = (jax.random.uniform(k6, shape3) > 0.5).astype(jnp.float32)
    out3 = jax.block_until_ready(
        dice_metric(inputs3, targets3, max_tile_cols=512))
    ref3 = _reference_dice(inputs3, targets3)
    assert jnp.allclose(out3, ref3, atol=1e-5, rtol=1e-5), (out3, ref3)

    print("KERNEL_OK")
</pallas_src>

<mosaic_0001>
module attributes {stable_mosaic.version = 11 : i64} {
  func.func @kernel(%arg0: i32, %arg1: i32, %arg2: memref<2x8x128xf32, #tpu.memory_space<vmem>>, %arg3: memref<2x8x128xf32, #tpu.memory_space<vmem>>, %arg4: memref<1x2x128xf32, #tpu.memory_space<vmem>>, %arg5: memref<1x2x128xf32, #tpu.memory_space<vmem>>) attributes {dimension_semantics = [#tpu.dimension_semantics<parallel>, #tpu.dimension_semantics<arbitrary>], iteration_bounds = array<i64: 1, 1>, scalar_prefetch = 0 : i64, scratch_operands = 0 : i64, tpu.core_type = #tpu.core_type<tc>, window_params = [{transform_indices = @transform_0, window_bounds = array<i64: 2, 8, 128>}, {transform_indices = @transform_1, window_bounds = array<i64: 2, 8, 128>}, {transform_indices = @transform_2, window_bounds = array<i64: 1, 2, 128>}, {transform_indices = @transform_3, window_bounds = array<i64: 1, 2, 128>}]} {
    %c0_i32 = arith.constant 0 : i32
    %0 = arith.cmpi eq, %arg1, %c0_i32 : i32
    %1 = arith.extui %0 : i1 to i32
    %c0_i32_0 = arith.constant 0 : i32
    %2 = arith.cmpi ne, %1, %c0_i32_0 : i32
    scf.if %2 {
      %cst_11 = arith.constant 0.000000e+00 : f32
      %17 = vector.broadcast %cst_11 : f32 to vector<1x2x128xf32>
      %c0_12 = arith.constant 0 : index
      %c0_13 = arith.constant 0 : index
      %c0_14 = arith.constant 0 : index
      %18 = vector.load %arg4[%c0_12, %c0_13, %c0_14] : memref<1x2x128xf32, #tpu.memory_space<vmem>>, vector<1x2x128xf32>
      tpu.vector_store %arg4[%c0_12, %c0_13, %c0_14], %17 {strides = array<i32>} : memref<1x2x128xf32, #tpu.memory_space<vmem>>, vector<1x2x128xf32>,
      %cst_15 = arith.constant 0.000000e+00 : f32
      %19 = vector.broadcast %cst_15 : f32 to vector<1x2x128xf32>
      %c0_16 = arith.constant 0 : index
      %c0_17 = arith.constant 0 : index
      %c0_18 = arith.constant 0 : index
      %20 = vector.load %arg5[%c0_16, %c0_17, %c0_18] : memref<1x2x128xf32, #tpu.memory_space<vmem>>, vector<1x2x128xf32>
      tpu.vector_store %arg5[%c0_16, %c0_17, %c0_18], %19 {strides = array<i32>} : memref<1x2x128xf32, #tpu.memory_space<vmem>>, vector<1x2x128xf32>,
    } else {
    }
    %c0 = arith.constant 0 : index
    %c0_1 = arith.constant 0 : index
    %c0_2 = arith.constant 0 : index
    %3 = vector.load %arg2[%c0, %c0_1, %c0_2] : memref<2x8x128xf32, #tpu.memory_space<vmem>>, vector<2x8x128xf32>
    %c0_3 = arith.constant 0 : index
    %c0_4 = arith.constant 0 : index
    %c0_5 = arith.constant 0 : index
    %4 = vector.load %arg3[%c0_3, %c0_4, %c0_5] : memref<2x8x128xf32, #tpu.memory_space<vmem>>, vector<2x8x128xf32>
    %cst = arith.constant 5.000000e-01 : f32
    %5 = vector.broadcast %cst : f32 to vector<2x8x128xf32>
    %6 = arith.cmpf ogt, %3, %5 : vector<2x8x128xf32>
    %c1_i32 = arith.constant 1 : i32
    %7 = arith.muli %arg0, %c1_i32 : i32
    %8 = arith.addi %7, %arg1 : i32
    %c8_i32 = arith.constant 8 : i32
    %9 = arith.muli %8, %c8_i32 : i32
    %c8_i32_6 = arith.constant 8 : i32
    %10 = arith.subi %c8_i32_6, %9 : i32
    %c8_i32_7 = arith.constant 8 : i32
    %11 = arith.cmpi sge, %10, %c8_i32_7 : i32
    %12 = arith.extui %11 : i1 to i32
    %c0_i32_8 = arith.constant 0 : i32
    %13 = arith.cmpi ne, %12, %c0_i32_8 : i32
    scf.if %13 {
      %17 = arith.extui %6 : vector<2x8x128xi1> to vector<2x8x128xi32>
      %18 = arith.sitofp %17 : vector<2x8x128xi32> to vector<2x8x128xf32>
      %c0_11 = arith.constant 0 : index
      %c0_12 = arith.constant 0 : index
      %c0_13 = arith.constant 0 : index
      %19 = vector.load %arg4[%c0_11, %c0_12, %c0_13] : memref<1x2x128xf32, #tpu.memory_space<vmem>>, vector<1x2x128xf32>
      %20 = vector.shape_cast %19 : vector<1x2x128xf32> to vector<2x128xf32>
      %21 = arith.mulf %18, %4 : vector<2x8x128xf32>
      %cst_14 = arith.constant dense<0.000000e+00> : vector<2x128xf32>
      %22 = vector.multi_reduction <add>, %21, %cst_14 [1] : vector<2x8x128xf32> to vector<2x128xf32>
      %23 = arith.addf %20, %22 : vector<2x128xf32>
      %c0_15 = arith.constant 0 : index
      %c0_16 = arith.constant 0 : index
      %c0_17 = arith.constant 0 : index
      %24 = vector.load %arg4[%c0_15, %c0_16, %c0_17] : memref<1x2x128xf32, #tpu.memory_space<vmem>>, vector<1x2x128xf32>
      %25 = vector.shape_cast %24 : vector<1x2x128xf32> to vector<2x128xf32>
      %26 = vector.shape_cast %23 : vector<2x128xf32> to vector<1x2x128xf32>
      tpu.vector_store %arg4[%c0_15, %c0_16, %c0_17], %26 {strides = array<i32>} : memref<1x2x128xf32, #tpu.memory_space<vmem>>, vector<1x2x128xf32>,
      %c0_18 = arith.constant 0 : index
      %c0_19 = arith.constant 0 : index
      %c0_20 = arith.constant 0 : index
      %27 = vector.load %arg5[%c0_18, %c0_19, %c0_20] : memref<1x2x128xf32, #tpu.memory_space<vmem>>, vector<1x2x128xf32>
      %28 = vector.shape_cast %27 : vector<1x2x128xf32> to vector<2x128xf32>
      %29 = arith.addf %18, %4 : vector<2x8x128xf32>
      %cst_21 = arith.constant dense<0.000000e+00> : vector<2x128xf32>
      %30 = vector.multi_reduction <add>, %29, %cst_21 [1] : vector<2x8x128xf32> to vector<2x128xf32>
      %31 = arith.addf %28, %30 : vector<2x128xf32>
      %c0_22 = arith.constant 0 : index
      %c0_23 = arith.constant 0 : index
      %c0_24 = arith.constant 0 : index
      %32 = vector.load %arg5[%c0_22, %c0_23, %c0_24] : memref<1x2x128xf32, #tpu.memory_space<vmem>>, vector<1x2x128xf32>
      %33 = vector.shape_cast %32 : vector<1x2x128xf32> to vector<2x128xf32>
      %34 = vector.shape_cast %31 : vector<2x128xf32> to vector<1x2x128xf32>
      tpu.vector_store %arg5[%c0_22, %c0_23, %c0_24], %34 {strides = array<i32>} : memref<1x2x128xf32, #tpu.memory_space<vmem>>, vector<1x2x128xf32>,
    } else {
    }
    %c8_i32_9 = arith.constant 8 : i32
    %14 = arith.cmpi slt, %10, %c8_i32_9 : i32
    %15 = arith.extui %14 : i1 to i32
    %c0_i32_10 = arith.constant 0 : i32
    %16 = arith.cmpi ne, %15, %c0_i32_10 : i32
    scf.if %16 {
      %17 = tpu.iota {dimensions = array<i32: 1>} : vector<2x8x128xi32>
      %18 = vector.broadcast %10 : i32 to vector<2x8x128xi32>
      %19 = arith.cmpi slt, %17, %18 : vector<2x8x128xi32>
      %20 = arith.andi %6, %19 : vector<2x8x128xi1>
      %21 = arith.extui %20 : vector<2x8x128xi1> to vector<2x8x128xi32>
      %22 = arith.sitofp %21 : vector<2x8x128xi32> to vector<2x8x128xf32>
      %cst_11 = arith.constant 0.000000e+00 : f32
      %23 = vector.broadcast %cst_11 : f32 to vector<2x8x128xf32>
      %24 = arith.select %19, %4, %23 : vector<2x8x128xi1>, vector<2x8x128xf32>
      %c0_12 = arith.constant 0 : index
      %c0_13 = arith.constant 0 : index
      %c0_14 = arith.constant 0 : index
      %25 = vector.load %arg4[%c0_12, %c0_13, %c0_14] : memref<1x2x128xf32, #tpu.memory_space<vmem>>, vector<1x2x128xf32>
      %26 = vector.shape_cast %25 : vector<1x2x128xf32> to vector<2x128xf32>
      %27 = arith.mulf %22, %24 : vector<2x8x128xf32>
      %cst_15 = arith.constant dense<0.000000e+00> : vector<2x128xf32>
      %28 = vector.multi_reduction <add>, %27, %cst_15 [1] : vector<2x8x128xf32> to vector<2x128xf32>
      %29 = arith.addf %26, %28 : vector<2x128xf32>
      %c0_16 = arith.constant 0 : index
      %c0_17 = arith.constant 0 : index
      %c0_18 = arith.constant 0 : index
      %30 = vector.load %arg4[%c0_16, %c0_17, %c0_18] : memref<1x2x128xf32, #tpu.memory_space<vmem>>, vector<1x2x128xf32>
      %31 = vector.shape_cast %30 : vector<1x2x128xf32> to vector<2x128xf32>
      %32 = vector.shape_cast %29 : vector<2x128xf32> to vector<1x2x128xf32>
      tpu.vector_store %arg4[%c0_16, %c0_17, %c0_18], %32 {strides = array<i32>} : memref<1x2x128xf32, #tpu.memory_space<vmem>>, vector<1x2x128xf32>,
      %c0_19 = arith.constant 0 : index
      %c0_20 = arith.constant 0 : index
      %c0_21 = arith.constant 0 : index
      %33 = vector.load %arg5[%c0_19, %c0_20, %c0_21] : memref<1x2x128xf32, #tpu.memory_space<vmem>>, vector<1x2x128xf32>
      %34 = vector.shape_cast %33 : vector<1x2x128xf32> to vector<2x128xf32>
      %35 = arith.addf %22, %24 : vector<2x8x128xf32>
      %cst_22 = arith.constant dense<0.000000e+00> : vector<2x128xf32>
      %36 = vector.multi_reduction <add>, %35, %cst_22 [1] : vector<2x8x128xf32> to vector<2x128xf32>
      %37 = arith.addf %34, %36 : vector<2x128xf32>
      %c0_23 = arith.constant 0 : index
      %c0_24 = arith.constant 0 : index
      %c0_25 = arith.constant 0 : index
      %38 = vector.load %arg5[%c0_23, %c0_24, %c0_25] : memref<1x2x128xf32, #tpu.memory_space<vmem>>, vector<1x2x128xf32>
      %39 = vector.shape_cast %38 : vector<1x2x128xf32> to vector<2x128xf32>
      %40 = vector.shape_cast %37 : vector<2x128xf32> to vector<1x2x128xf32>
      tpu.vector_store %arg5[%c0_23, %c0_24, %c0_25], %40 {strides = array<i32>} : memref<1x2x128xf32, #tpu.memory_space<vmem>>, vector<1x2x128xf32>,
    } else {
    }
    return
  }
  func.func @transform_0(%arg0: i32, %arg1: i32) -> (i32, i32, i32) {
    %c1_i32 = arith.constant 1 : i32
    %0 = arith.muli %arg0, %c1_i32 : i32
    %1 = arith.addi %0, %arg1 : i32
    %c0_i32 = arith.constant 0 : i32
    %2 = arith.minsi %1, %c0_i32 : i32
    %c0_i32_0 = arith.constant 0 : i32
    %c0_i32_1 = arith.constant 0 : i32
    %c0_i32_2 = arith.constant 0 : i32
    return %c0_i32_0, %2, %c0_i32_1 : i32, i32, i32
  }
  func.func @transform_1(%arg0: i32, %arg1: i32) -> (i32, i32, i32) {
    %c1_i32 = arith.constant 1 : i32
    %0 = arith.muli %arg0, %c1_i32 : i32
    %1 = arith.addi %0, %arg1 : i32
    %c0_i32 = arith.constant 0 : i32
    %2 = arith.minsi %1, %c0_i32 : i32
    %c0_i32_0 = arith.constant 0 : i32
    %c0_i32_1 = arith.constant 0 : i32
    %c0_i32_2 = arith.constant 0 : i32
    return %c0_i32_0, %2, %c0_i32_1 : i32, i32, i32
  }
  func.func @transform_2(%arg0: i32, %arg1: i32) -> (i32, i32, i32) {
    %c0_i32 = arith.constant 0 : i32
    %c0_i32_0 = arith.constant 0 : i32
    %c0_i32_1 = arith.constant 0 : i32
    return %arg0, %c0_i32, %c0_i32_0 : i32, i32, i32
  }
  func.func @transform_3(%arg0: i32, %arg1: i32) -> (i32, i32, i32) {
    %c0_i32 = arith.constant 0 : i32
    %c0_i32_0 = arith.constant 0 : i32
    %c0_i32_1 = arith.constant 0 : i32
    return %arg0, %c0_i32, %c0_i32_0 : i32, i32, i32
  }
}

</mosaic_0001>

<bundles_post_ra>
// kernel: tpu_custom_call.1
= control target key start
LH: loop header
LB: loop body
LE: loop exit
PB: predicated region body
PF: predicated region fallthrough
CT: control target
= control target key end

     0   :  { %9 = vsyncpa [#allocation3], 0  ;;  %s400_s0 = inlined_call_operand.hbm [shape: f32[2,8,128], index: 0, kind: input, shape index: {}]   ;;  %s401_s1 = inlined_call_operand.hbm [shape: f32[2,8,128], index: 1, kind: input, shape index: {}]   ;;  %s402_s2 = inlined_call_operand.hbm [shape: f32[1,2,128], index: 2, kind: output, shape index: {0}]   ;;  %s403_s3 = inlined_call_operand.hbm [shape: f32[1,2,128], index: 3, kind: output, shape index: {1}]  }
   0x1   :  { %10 = vsyncpa [#allocation6], 0 }
   0x2   :  { %11 = vsyncpa [#allocation4], 0 }
   0x3   :  { %12 = vsyncpa [#allocation9], 0  ;;  %s325_s12 = smov [#allocation2]   ;;  %s229_s16 = scalar_lea.hbm %s400_s0, 256 }
   0x4   :  { %s23_s13 = sshll.u32 %s325_s12, 4  ;;  %p230_p0 = scmp.ne.s32.totalorder %s400_s0, %s229_s16  ;;  %s24_s13 = int_to_ptr.vmem [resolvable:$true] %s23_s13 }
   0x5   :  { %p233_p1 = scmp.lt.u32.totalorder %s229_s16, %s400_s0 }
   0x7   :  { %p235_p2 = pnand %p233_p1, %p230_p0 }
   0x9   :  { %238 = shalt.err (!%p235_p2)
}
   0xa   :  { %s239_s21 = scalar_lea.vmem %s24_s13, 256  ;;  %p244_p4 = scmp.lt.s32.totalorder %s24_s13, %s24_s13 }
   0xb   :  { %p240_p3 = scmp.ne.s32.totalorder %s24_s13, %s239_s21  ;;  %p245_p5 = scmp.lt.s32.totalorder %s239_s21, %s239_s21 }
   0xd   :  { %p246_p6 = por %p245_p5, %p244_p4 }
   0xf   :  { %p247_p7 = pnand %p246_p6, %p240_p3 }
  0x11   :  { %250 = shalt.err (!%p247_p7)
}
  0x12   :  { %s326_s22 = smov 128   ;;  %s327_s23 = smov 8  }
  0x13   :  { %29 = dma.hbm_to_vmem [thread:$0]  %s400_s0, 256, %s24_s13, [#allocation3], %s326_s22, %s326_s22, %s327_s23  }
  0x14   :  { %s328_s26 = smov [#allocation5]   ;;  %s251_s30 = scalar_lea.hbm %s401_s1, 256 }
  0x15   :  { %s40_s27 = sshll.u32 %s328_s26, 4  ;;  %p252_p8 = scmp.ne.s32.totalorder %s401_s1, %s251_s30  ;;  %s41_s27 = int_to_ptr.vmem [resolvable:$true] %s40_s27 }
  0x16   :  { %p255_p9 = scmp.lt.u32.totalorder %s251_s30, %s401_s1 }
  0x18   :  { %p257_p10 = pnand %p255_p9, %p252_p8 }
  0x1a   :  { %260 = shalt.err (!%p257_p10)
}
  0x1b   :  { %s261_s8 = scalar_lea.vmem %s41_s27, 256  ;;  %p266_p12 = scmp.lt.s32.totalorder %s41_s27, %s41_s27 }
  0x1c   :  { %p262_p11 = scmp.ne.s32.totalorder %s41_s27, %s261_s8  ;;  %p267_p13 = scmp.lt.s32.totalorder %s261_s8, %s261_s8 }
  0x1e   :  { %p268_p0 = por %p267_p13, %p266_p12 }
  0x20   :  { %p269_p1 = pnand %p268_p0, %p262_p11 }
  0x22   :  { %272 = shalt.err (!%p269_p1)
}
  0x23   :  { %46 = dma.hbm_to_vmem [thread:$0]  %s401_s1, 256, %s41_s27, [#allocation6], %s326_s22, %s326_s22, %s327_s23  }
  0x24   :  { %317 = dma.done.wait [#allocation3], 256  }
  0x25   :  { %318 = vsyncadd [#allocation3], 4294967040 }
  0x26   :  { %319 = dma.done.wait [#allocation6], 256  }
  0x27   :  { %320 = vsyncadd [#allocation6], 4294967040  ;;  %v329_v0 = vmov 0.0   ;;  %v65_v1 = vld [vmem:[#allocation2] sm:$0xff]  ;;  %v66_v2 = vld [vmem:[#allocation2 + $0x8] sm:$0xff]  ;;  %vm99_vm2 = vcmask 1041409  }
  0x28   :  { %63 = vst [vmem:[#allocation7] sm:$0x3] %v329_v0  ;;  %64 = vst [vmem:[#allocation8] sm:$0x3] %v329_v0  ;;  %v67_v3 = vld [vmem:[#allocation5] sm:$0xff]  ;;  %v68_v4 = vld [vmem:[#allocation5 + $0x8] sm:$0xff] }
  0x29   :  { %vm69_vm0 = vcmp.gt.f32.partialorder %v65_v1, 0.5  ;;  %vm70_vm1 = vcmp.gt.f32.partialorder %v66_v2, 0.5  ;;  %s330_s1 = smov [#allocation7]   ;;  %s331_s11 = smov [#allocation8]  }
  0x2a   :  { %v218_v5 = vsel %vm69_vm0, 1.0, %v329_v0  ;;  %v219_v6 = vsel %vm70_vm1, 1.0, %v329_v0  ;;  %s190_s10 = sshll.u32 %s330_s1, 4  ;;  %s200_s12 = sshll.u32 %s331_s11, 4  ;;  %s191_s10 = int_to_ptr.vmem [resolvable:$true] %s190_s10  ;;  %s201_s12 = int_to_ptr.vmem [resolvable:$true] %s200_s12 }
  0x2b   :  { %v83_v7 = vmul.f32 %v218_v5, %v67_v3  ;;  %v84_v8 = vmul.f32 %v219_v6, %v68_v4  ;;  %v105_v9 = vadd.f32 %v218_v5, %v67_v3  ;;  %v106_v10 = vadd.f32 %v219_v6, %v68_v4  ;;  %s273_s13 = scalar_lea.vmem %s191_s10, 32  ;;  %p278_p3 = scmp.lt.s32.totalorder %s191_s10, %s191_s10 }
  0x2c   :  { %p274_p2 = scmp.ne.s32.totalorder %s191_s10, %s273_s13  ;;  %p279_p4 = scmp.lt.s32.totalorder %s273_s13, %s273_s13 }
  0x2d   :  { %v85_v11 = vrot.slane %v83_v7, 4  ;;  %v91_v12 = vrot.slane %v84_v8, 4  ;;  %v107_v13 = vrot.slane %v105_v9, 4  ;;  %v113_v14 = vrot.slane %v106_v10, 4 }
  0x2e   :  { %p280_p5 = por %p279_p4, %p278_p3 }
  0x2f   :  { %v86_v15 = vadd.f32 %v85_v11, %v83_v7  ;;  %v92_v16 = vadd.f32 %v91_v12, %v84_v8  ;;  %v108_v17 = vadd.f32 %v107_v13, %v105_v9  ;;  %v114_v18 = vadd.f32 %v113_v14, %v106_v10  ;;  %v82_v31 = vld [vmem:[#allocation7] sm:$0x3]  ;;  %v104_v34 = vld [vmem:[#allocation8] sm:$0x3] }
  0x30   :  { %p281_p6 = pnand %p280_p5, %p274_p2 }
  0x31   :  { %v87_v19 = vrot.slane %v86_v15, 2  ;;  %v93_v20 = vrot.slane %v92_v16, 2  ;;  %v109_v21 = vrot.slane %v108_v17, 2  ;;  %v115_v22 = vrot.slane %v114_v18, 2 }
  0x33   :  { %v88_v23 = vadd.f32 %v87_v19, %v86_v15  ;;  %v94_v24 = vadd.f32 %v93_v20, %v92_v16  ;;  %v110_v25 = vadd.f32 %v109_v21, %v108_v17  ;;  %v116_v26 = vadd.f32 %v115_v22, %v114_v18 }
  0x35   :  { %v89_v27 = vrot.slane %v88_v23, 1  ;;  %v95_v28 = vrot.slane %v94_v24, 1  ;;  %v111_v29 = vrot.slane %v110_v25, 1  ;;  %v117_v30 = vrot.slane %v116_v26, 1 }
  0x37   :  { %v90_v32 = vadd.f32 %v89_v27, %v88_v23  ;;  %v96_v33 = vadd.f32 %v95_v28, %v94_v24  ;;  %v112_v35 = vadd.f32 %v111_v29, %v110_v25  ;;  %v118_v36 = vadd.f32 %v117_v30, %v116_v26 }
  0x39   :  { %v100_v37 = vsel %vm99_vm2, %v96_v33, %v90_v32  ;;  %v121_v38 = vsel %vm99_vm2, %v118_v36, %v112_v35 }
  0x3a   :  { %v102_v39 = vadd.f32 %v100_v37, %v82_v31  ;;  %v123_v40 = vadd.f32 %v121_v38, %v104_v34 }
  0x3c   :  { %103 = vst [vmem:[#allocation7] sm:$0x3] %v102_v39  ;;  %124 = vst [vmem:[#allocation8] sm:$0x3] %v123_v40 }
  0x3d   :  { %284 = shalt.err (!%p281_p6)
}
  0x3e   :  { %s285_s16 = scalar_lea.hbm %s402_s2, 32 }
  0x3f   :  { %p286_p7 = scmp.ne.s32.totalorder %s402_s2, %s285_s16  ;;  %p289_p8 = scmp.lt.u32.totalorder %s285_s16, %s402_s2 }
  0x41   :  { %p291_p9 = pnand %p289_p8, %p286_p7 }
  0x43   :  { %294 = shalt.err (!%p291_p9)
}
  0x44   :  { %193 = dma.vmem_to_hbm [thread:$0]  %s191_s10, 32, %s402_s2, [#allocation4]  }
  0x45   :  { %s295_s23 = scalar_lea.vmem %s201_s12, 32  ;;  %p300_p11 = scmp.lt.s32.totalorder %s201_s12, %s201_s12 }
  0x46   :  { %p296_p10 = scmp.ne.s32.totalorder %s201_s12, %s295_s23  ;;  %p301_p12 = scmp.lt.s32.totalorder %s295_s23, %s295_s23 }
  0x48   :  { %p302_p13 = por %p301_p12, %p300_p11 }
  0x4a   :  { %p303_p0 = pnand %p302_p13, %p296_p10 }
  0x4c   :  { %306 = shalt.err (!%p303_p0)
}
  0x4d   :  { %s307_s26 = scalar_lea.hbm %s403_s3, 32 }
  0x4e   :  { %p308_p1 = scmp.ne.s32.totalorder %s403_s3, %s307_s26  ;;  %p311_p2 = scmp.lt.u32.totalorder %s307_s26, %s403_s3 }
  0x50   :  { %p313_p3 = pnand %p311_p2, %p308_p1 }
  0x52   :  { %316 = shalt.err (!%p313_p3)
}
  0x53   :  { %203 = dma.vmem_to_hbm [thread:$0]  %s201_s12, 32, %s403_s3, [#allocation9]  }
  0x54   :  { %321 = dma.done.wait [#allocation4], 32  }
  0x55   :  { %322 = vsyncadd [#allocation4], 4294967264 }
  0x56   :  { %323 = dma.done.wait [#allocation9], 32  }
  0x57   :  { %324 = vsyncadd [#allocation9], 4294967264 }
  0x58   :  { %210 = vsyncpa [#allocation3], 1 }
  0x59   :  { %211 = vsyncpa [#allocation6], 1 }
  0x5a   :  { %212 = vsyncpa [#allocation4], 1 }
  0x5b   :  { %213 = vsyncpa [#allocation9], 1 }

</bundles_post_ra>
